<compile_context>
chip_gen: v7x
topology: tpu7x:2x2x1
jax: 0.10.0
libtpu: 0.0.40
codegen_flags: <defaults>
</compile_context>

<pallas_src>
import functools
from typing import List, Optional, Tuple

import jax
import jax.numpy as jnp
from jax.experimental import pallas as pl
from jax.experimental.pallas import tpu as pltpu


def _round_up(x: int, m: int) -> int:
    return (x + m - 1) // m * m


# --------------------------------------------------------------------------- #
# Kernel
# --------------------------------------------------------------------------- #
def _fused_mlp_kernel(*refs, n_mid: int, use_tanh: bool, compute_dtype):
    """Run one batch tile through the whole MLP.

    refs (n_mid > 0):  x(tm,F_in), w0(F_in,F), b0(1,F), wm(n_mid,F,F), bm(n_mid,1,F),
                       wl(F,F_out), bl(1,F_out), o(tm,F_out)
    refs (n_mid == 0): x, w0, b0, wl, bl, o

    Matmuls run on the MXU in `compute_dtype` with f32 accumulation; bias add and
    activations (LeakyReLU / tanh) stay in f32.
    """
    if n_mid > 0:
        x_ref, w0_ref, b0_ref, wm_ref, bm_ref, wl_ref, bl_ref, o_ref = refs
    else:
        x_ref, w0_ref, b0_ref, wl_ref, bl_ref, o_ref = refs

    def cast(v):
        return v if v.dtype == compute_dtype else v.astype(compute_dtype)

    def leaky(v):  # nn.LeakyReLU default negative_slope = 0.01
        return jnp.where(v >= 0, v, jnp.float32(0.01) * v)

    # Layer 0: (tm, F_in) @ (F_in, F)
    h = jnp.dot(cast(x_ref[...]), w0_ref[...], preferred_element_type=jnp.float32)
    h = leaky(h + b0_ref[...].astype(jnp.float32))

    # Middle layers: (tm, F) @ (F, F), `depth` times.
    if n_mid > 0:
        def layer(l, hh):
            y = jnp.dot(cast(hh), wm_ref[l], preferred_element_type=jnp.float32)
            return leaky(y + bm_ref[l].astype(jnp.float32))

        if n_mid >= 8:
            # Deep nets: bound instruction footprint with a loop + dynamic leading index.
            h = jax.lax.fori_loop(0, n_mid, layer, h)
        else:
            for l in range(n_mid):  # static unroll for shallow nets
                h = layer(l, h)

    # Output layer: (tm, F) @ (F, F_out)
    y = jnp.dot(cast(h), wl_ref[...], preferred_element_type=jnp.float32)
    y = y + bl_ref[...].astype(jnp.float32)
    if use_tanh:
        y = jnp.tanh(y)
    o_ref[...] = y.astype(o_ref.dtype)


# --------------------------------------------------------------------------- #
# Parameters
# --------------------------------------------------------------------------- #
def init_basic_fc_net_params(
    key: jax.Array,
    dim: int,
    depth: int,
    hidden_dim: int = 256,
    out_dim: Optional[int] = None,
) -> List[Tuple[jax.Array, jax.Array]]:
    """Parameters matching the nn.Linear shapes of the module, W in (in, out) layout."""
    out_dim = dim if out_dim is None else out_dim
    sizes = [(dim, hidden_dim)] + [(hidden_dim, hidden_dim)] * depth + [(hidden_dim, out_dim)]
    params = []
    for fan_in, fan_out in sizes:
        key, kw, kb = jax.random.split(key, 3)
        bound = 1.0 / (fan_in ** 0.5)  # PyTorch Linear default U(-1/sqrt(fan_in), ...)
        w = jax.random.uniform(kw, (fan_in, fan_out), jnp.float32, -bound, bound)
        b = jax.random.uniform(kb, (fan_out,), jnp.float32, -bound, bound)
        params.append((w, b))
    return params


def pack_basic_fc_params(params, param_dtype=jnp.bfloat16):
    """Zero-pad + stack the per-layer weights ONCE (hoisted out of the forward path).

    Returns (w0, b0, wm, bm, wl, bl):
      w0: (round_up(dim,128), F)       b0: (1, F)
      wm: (depth, F, F) or None        bm: (depth, 1, F) or None
      wl: (F, round_up(out_dim,128))   bl: (1, round_up(out_dim,128))
    where F = round_up(hidden_dim, 128). Padded rows/cols are exactly zero.
    """
    dim = params[0][0].shape[0]
    hidden = params[0][0].shape[1]
    out_dim = params[-1][0].shape[1]
    F_in, F, F_out = _round_up(dim, 128), _round_up(hidden, 128), _round_up(out_dim, 128)

    def pad_w(w, rows, cols):
        return jnp.pad(w.astype(param_dtype),
                       ((0, rows - w.shape[0]), (0, cols - w.shape[1])))

    def pad_b(b, cols):
        return jnp.pad(b.astype(param_dtype), (0, cols - b.shape[0]))[None, :]

    w0, b0 = pad_w(params[0][0], F_in, F), pad_b(params[0][1], F)
    wl, bl = pad_w(params[-1][0], F, F_out), pad_b(params[-1][1], F_out)
    mids = params[1:-1]
    if mids:
        wm = jnp.stack([pad_w(w, F, F) for (w, _) in mids])
        bm = jnp.stack([pad_b(b, F) for (_, b) in mids])
    else:
        wm, bm = None, None
    return (w0, b0, wm, bm, wl, bl)


# --------------------------------------------------------------------------- #
# Wrapper
# --------------------------------------------------------------------------- #
def _resident_spec(shape, single_buffer: bool) -> pl.BlockSpec:
    """BlockSpec for a VMEM-resident operand (constant block index across the grid)."""
    rank = len(shape)
    index_map = lambda i, _rank=rank: (0,) * _rank
    if single_buffer:
        # Constant index_map -> double-buffering buys nothing; halve the VMEM footprint.
        return pl.BlockSpec(shape, index_map, pipeline_mode=pl.Buffered(1))
    return pl.BlockSpec(shape, index_map)


def basic_fully_connected_net(
    x: jax.Array,
    packed,                        # output of pack_basic_fc_params (pack ONCE, reuse)
    *,
    out_dim: int,
    use_tanh: bool = False,
    use_bn: bool = False,
    block_m: int = 512,
    single_buffer_weights: bool = True,
) -> jax.Array:
    """Forward pass of BasicFullyConnectedNet (use_bn=False) as one fused Pallas kernel."""
    if use_bn:
        # TODO(synk): BatchNorm1d path not implemented (PyTorch module default is False).
        raise NotImplementedError("use_bn=True is not supported by the Pallas kernel")

    w0, b0, wm, bm, wl, bl = packed
    B, dim = x.shape
    F_in, F = w0.shape
    F_out = wl.shape[1]
    n_mid = 0 if wm is None else wm.shape[0]
    param_dtype = w0.dtype
    assert dim <= F_in and out_dim <= F_out

    # ---- batch tiling ----------------------------------------------------- #
    tm = _round_up(min(block_m, B), 8)
    if pl.cdiv(B, tm) < 2:
        # >=2 grid steps lets dimension_semantics=("parallel",) shard the batch across
        # both v7x TensorCores; keep tiles >=256 rows (MXU fill) when the batch allows.
        tm = min(tm, max(256, _round_up(pl.cdiv(B, 2), 8)))
    B_pad = _round_up(B, tm)
    grid = (B_pad // tm,)

    # Pad the batch to a full tile and lanes only to F_in (NOT to the hidden width).
    x_pad = jnp.pad(x, ((0, B_pad - B), (0, F_in - dim)))

    # ---- VMEM budget ------------------------------------------------------ #
    itemsize_w = jnp.dtype(param_dtype).itemsize
    itemsize_x = jnp.dtype(x.dtype).itemsize
    wbuf = 1 if single_buffer_weights else 2
    weight_bytes = wbuf * itemsize_w * (
        F_in * F + n_mid * F * F + F * F_out + F + n_mid * F + F_out)
    io_bytes = 2 * tm * (F_in + F_out) * itemsize_x         # double-buffered in/out tiles
    act_bytes = 4 * tm * max(F_in, F, F_out) * 4            # live f32 intermediates
    vmem_limit = int(1.25 * (weight_bytes + io_bytes + act_bytes)) + (2 << 20)
    vmem_limit = max(vmem_limit, 32 << 20)                   # never below the default scoped limit
    try:
        vmem_cap = int(pltpu.get_tpu_info().vmem_capacity_bytes)
    except Exception:
        vmem_cap = 128 << 20
    vmem_limit = min(vmem_limit, int(0.9 * vmem_cap))

    # ---- specs / args ------------------------------------------------------ #
    in_specs = [pl.BlockSpec((tm, F_in), lambda i: (i, 0))]          # batch tile of x
    args = [x_pad]
    in_specs += [_resident_spec((F_in, F), single_buffer_weights),   # layer-0 weight / bias
                 _resident_spec((1, F), single_buffer_weights)]
    args += [w0, b0]
    if n_mid > 0:
        in_specs += [_resident_spec((n_mid, F, F), single_buffer_weights),
                     _resident_spec((n_mid, 1, F), single_buffer_weights)]
        args += [wm, bm]
    in_specs += [_resident_spec((F, F_out), single_buffer_weights),  # output-layer weight / bias
                 _resident_spec((1, F_out), single_buffer_weights)]
    args += [wl, bl]

    cost = pl.CostEstimate(
        flops=2 * B_pad * (F_in * F + n_mid * F * F + F * F_out),
        transcendentals=(B_pad * F_out if use_tanh else 0),
        bytes_accessed=(B_pad * F_in * itemsize_x + B_pad * F_out * itemsize_x
                        + weight_bytes // wbuf),
    )

    kernel = functools.partial(_fused_mlp_kernel, n_mid=n_mid, use_tanh=use_tanh,
                               compute_dtype=param_dtype)

    out = pl.pallas_call(
        kernel,
        out_shape=jax.ShapeDtypeStruct((B_pad, F_out), x.dtype),
        grid=grid,
        in_specs=in_specs,
        out_specs=pl.BlockSpec((tm, F_out), lambda i: (i, 0)),
        compiler_params=pltpu.CompilerParams(
            dimension_semantics=("parallel",),     # megacore-shardable batch axis
            vmem_limit_bytes=vmem_limit,
        ),
        cost_estimate=cost,
    )(*args)

    return out[:B, :out_dim]


# --------------------------------------------------------------------------- #
# Reference & tests
# --------------------------------------------------------------------------- #
def _reference_forward(x, params, use_tanh):
    h = x
    n = len(params)
    for i, (w, b) in enumerate(params):
        h = h @ w + b
        if i < n - 1:
            h = jnp.where(h >= 0, h, 0.01 * h)
        elif use_tanh:
            h = jnp.tanh(h)
    return h


if __name__ == "__main__":
    key = jax.random.PRNGKey(0)
    k_p, k_x, k_x2, k_p3, k_x3 = jax.random.split(key, 5)

    # ---- Case 1: module-like small shapes, bf16 (default fast MXU) path ---- #
    batch, dim, depth, hidden_dim = 8, 32, 2, 64
    x = jax.random.normal(k_x, (batch, dim), jnp.float32)
    params = init_basic_fc_net_params(k_p, dim=dim, depth=depth, hidden_dim=hidden_dim)
    packed_bf16 = pack_basic_fc_params(params, jnp.bfloat16)
    packed_f32 = pack_basic_fc_params(params, jnp.float32)
    y_ref = _reference_forward(x, params, use_tanh=False)

    def make_fwd(sbw, **kw):
        return jax.jit(functools.partial(basic_fully_connected_net,
                                         single_buffer_weights=sbw, **kw))

    sbw = True
    try:
        fwd = make_fwd(sbw, out_dim=dim, use_tanh=False)
        y = jax.block_until_ready(fwd(x, packed_bf16))
    except Exception:
        # Fallback if this jax build rejects pipeline_mode=pl.Buffered(1) on a resident spec.
        sbw = False
        fwd = make_fwd(sbw, out_dim=dim, use_tanh=False)
        y = jax.block_until_ready(fwd(x, packed_bf16))
    assert y.shape == (batch, dim)
    assert jnp.allclose(y, y_ref, atol=1e-1, rtol=1e-1), "mismatch vs reference (bf16 path)"

    # f32 weights: exact-math check of the fused kernel (same jitted wrapper, retraced).
    y32 = jax.block_until_ready(fwd(x, packed_f32))
    assert jnp.allclose(y32, y_ref, atol=1e-4, rtol=1e-4), "mismatch vs reference (f32 path)"

    # ---- Case 2: batch tiling (B not a multiple of the tile) + tanh -------- #
    batch2 = 200
    x2 = jax.random.normal(k_x2, (batch2, dim), jnp.float32)
    fwd_tanh = make_fwd(sbw, out_dim=dim, use_tanh=True, block_m=128)
    y2 = jax.block_until_ready(fwd_tanh(x2, packed_bf16))
    y2_ref = _reference_forward(x2, params, use_tanh=True)
    assert y2.shape == (batch2, dim)
    assert jnp.allclose(y2, y2_ref, atol=1e-1, rtol=1e-1), "mismatch vs reference (tanh)"

    # ---- Case 3: deep net -> lax.fori_loop over the middle layers ---------- #
    batch3, dim3, depth3, hidden3 = 8, 16, 8, 32
    params3 = init_basic_fc_net_params(k_p3, dim=dim3, depth=depth3, hidden_dim=hidden3)
    x3 = jax.random.normal(k_x3, (batch3, dim3), jnp.float32)
    packed3 = pack_basic_fc_params(params3, jnp.float32)
    fwd3 = make_fwd(sbw, out_dim=dim3, use_tanh=False)
    y3 = jax.block_until_ready(fwd3(x3, packed3))
    y3_ref = _reference_forward(x3, params3, use_tanh=False)
    assert y3.shape == (batch3, dim3)
    assert jnp.allclose(y3, y3_ref, atol=1e-3, rtol=1e-3), "mismatch vs reference (deep/fori_loop)"

    print("KERNEL_OK")
</pallas_src>

<mosaic_0001>
module attributes {stable_mosaic.version = 11 : i64} {
  func.func @_fused_mlp_kernel(%arg0: i32, %arg1: memref<8x128xf32, #tpu.memory_space<vmem>>, %arg2: memref<128x128xbf16, #tpu.memory_space<vmem>>, %arg3: memref<1x128xbf16, #tpu.memory_space<vmem>>, %arg4: memref<2x128x128xbf16, #tpu.memory_space<vmem>>, %arg5: memref<2x1x128xbf16, #tpu.memory_space<vmem>>, %arg6: memref<128x128xbf16, #tpu.memory_space<vmem>>, %arg7: memref<1x128xbf16, #tpu.memory_space<vmem>>, %arg8: memref<8x128xf32, #tpu.memory_space<vmem>>) attributes {dimension_semantics = [#tpu.dimension_semantics<parallel>], iteration_bounds = array<i64: 1>, scalar_prefetch = 0 : i64, scratch_operands = 0 : i64, tpu.core_type = #tpu.core_type<tc>, window_params = [{transform_indices = @transform_0, window_bounds = array<i64: 8, 128>}, {pipeline_mode = #tpu.pipeline_mode<synchronous>, transform_indices = @transform_1, window_bounds = array<i64: 128, 128>}, {pipeline_mode = #tpu.pipeline_mode<synchronous>, transform_indices = @transform_2, window_bounds = array<i64: 1, 128>}, {pipeline_mode = #tpu.pipeline_mode<synchronous>, transform_indices = @transform_3, window_bounds = array<i64: 2, 128, 128>}, {pipeline_mode = #tpu.pipeline_mode<synchronous>, transform_indices = @transform_4, window_bounds = array<i64: 2, 1, 128>}, {pipeline_mode = #tpu.pipeline_mode<synchronous>, transform_indices = @transform_5, window_bounds = array<i64: 128, 128>}, {pipeline_mode = #tpu.pipeline_mode<synchronous>, transform_indices = @transform_6, window_bounds = array<i64: 1, 128>}, {transform_indices = @transform_7, window_bounds = array<i64: 8, 128>}]} {
    %c0 = arith.constant 0 : index
    %c0_0 = arith.constant 0 : index
    %0 = vector.load %arg1[%c0, %c0_0] : memref<8x128xf32, #tpu.memory_space<vmem>>, vector<8x128xf32>
    %1 = arith.truncf %0 : vector<8x128xf32> to vector<8x128xbf16>
    %c0_1 = arith.constant 0 : index
    %c0_2 = arith.constant 0 : index
    %2 = vector.load %arg2[%c0_1, %c0_2] : memref<128x128xbf16, #tpu.memory_space<vmem>>, vector<128x128xbf16>
    %cst = arith.constant dense<0.000000e+00> : vector<8x128xf32>
    %3 = tpu.matmul %1, %2, %cst {dimension_numbers = #tpu.dot_dimension_numbers<[1], [0], [0], [1], [0, 0, 1, 1], [], []>} : vector<8x128xbf16>, vector<128x128xbf16>, vector<8x128xf32> -> vector<8x128xf32>
    %c0_3 = arith.constant 0 : index
    %c0_4 = arith.constant 0 : index
    %4 = vector.load %arg3[%c0_3, %c0_4] : memref<1x128xbf16, #tpu.memory_space<vmem>>, vector<1x128xbf16>
    %5 = arith.extf %4 : vector<1x128xbf16> to vector<1x128xf32>
    %6 = vector.broadcast %5 : vector<1x128xf32> to vector<8x128xf32>
    %7 = arith.addf %3, %6 : vector<8x128xf32>
    %cst_5 = arith.constant 0.000000e+00 : f32
    %8 = vector.broadcast %cst_5 : f32 to vector<8x128xf32>
    %9 = arith.cmpf oge, %7, %8 : vector<8x128xf32>
    %cst_6 = arith.constant 0.00999999977 : f32
    %10 = vector.broadcast %cst_6 : f32 to vector<8x128xf32>
    %11 = arith.mulf %10, %7 : vector<8x128xf32>
    %12 = arith.select %9, %7, %11 : vector<8x128xi1>, vector<8x128xf32>
    %13 = arith.truncf %12 : vector<8x128xf32> to vector<8x128xbf16>
    %c0_7 = arith.constant 0 : index
    %c0_8 = arith.constant 0 : index
    %c0_9 = arith.constant 0 : index
    %14 = vector.load %arg4[%c0_7, %c0_8, %c0_9] : memref<2x128x128xbf16, #tpu.memory_space<vmem>>, vector<1x128x128xbf16>
    %15 = vector.shape_cast %14 : vector<1x128x128xbf16> to vector<128x128xbf16>
    %cst_10 = arith.constant dense<0.000000e+00> : vector<8x128xf32>
    %16 = tpu.matmul %13, %15, %cst_10 {dimension_numbers = #tpu.dot_dimension_numbers<[1], [0], [0], [1], [0, 0, 1, 1], [], []>} : vector<8x128xbf16>, vector<128x128xbf16>, vector<8x128xf32> -> vector<8x128xf32>
    %c0_11 = arith.constant 0 : index
    %c0_12 = arith.constant 0 : index
    %c0_13 = arith.constant 0 : index
    %17 = vector.load %arg5[%c0_11, %c0_12, %c0_13] : memref<2x1x128xbf16, #tpu.memory_space<vmem>>, vector<1x1x128xbf16>
    %18 = vector.shape_cast %17 : vector<1x1x128xbf16> to vector<1x128xbf16>
    %19 = arith.extf %18 : vector<1x128xbf16> to vector<1x128xf32>
    %20 = vector.broadcast %19 : vector<1x128xf32> to vector<8x128xf32>
    %21 = arith.addf %16, %20 : vector<8x128xf32>
    %cst_14 = arith.constant 0.000000e+00 : f32
    %22 = vector.broadcast %cst_14 : f32 to vector<8x128xf32>
    %23 = arith.cmpf oge, %21, %22 : vector<8x128xf32>
    %cst_15 = arith.constant 0.00999999977 : f32
    %24 = vector.broadcast %cst_15 : f32 to vector<8x128xf32>
    %25 = arith.mulf %24, %21 : vector<8x128xf32>
    %26 = arith.select %23, %21, %25 : vector<8x128xi1>, vector<8x128xf32>
    %27 = arith.truncf %26 : vector<8x128xf32> to vector<8x128xbf16>
    %c1 = arith.constant 1 : index
    %c0_16 = arith.constant 0 : index
    %c0_17 = arith.constant 0 : index
    %28 = vector.load %arg4[%c1, %c0_16, %c0_17] : memref<2x128x128xbf16, #tpu.memory_space<vmem>>, vector<1x128x128xbf16>
    %29 = vector.shape_cast %28 : vector<1x128x128xbf16> to vector<128x128xbf16>
    %cst_18 = arith.constant dense<0.000000e+00> : vector<8x128xf32>
    %30 = tpu.matmul %27, %29, %cst_18 {dimension_numbers = #tpu.dot_dimension_numbers<[1], [0], [0], [1], [0, 0, 1, 1], [], []>} : vector<8x128xbf16>, vector<128x128xbf16>, vector<8x128xf32> -> vector<8x128xf32>
    %c1_19 = arith.constant 1 : index
    %c0_20 = arith.constant 0 : index
    %c0_21 = arith.constant 0 : index
    %31 = vector.load %arg5[%c1_19, %c0_20, %c0_21] : memref<2x1x128xbf16, #tpu.memory_space<vmem>>, vector<1x1x128xbf16>
    %32 = vector.shape_cast %31 : vector<1x1x128xbf16> to vector<1x128xbf16>
    %33 = arith.extf %32 : vector<1x128xbf16> to vector<1x128xf32>
    %34 = vector.broadcast %33 : vector<1x128xf32> to vector<8x128xf32>
    %35 = arith.addf %30, %34 : vector<8x128xf32>
    %cst_22 = arith.constant 0.000000e+00 : f32
    %36 = vector.broadcast %cst_22 : f32 to vector<8x128xf32>
    %37 = arith.cmpf oge, %35, %36 : vector<8x128xf32>
    %cst_23 = arith.constant 0.00999999977 : f32
    %38 = vector.broadcast %cst_23 : f32 to vector<8x128xf32>
    %39 = arith.mulf %38, %35 : vector<8x128xf32>
    %40 = arith.select %37, %35, %39 : vector<8x128xi1>, vector<8x128xf32>
    %41 = arith.truncf %40 : vector<8x128xf32> to vector<8x128xbf16>
    %c0_24 = arith.constant 0 : index
    %c0_25 = arith.constant 0 : index
    %42 = vector.load %arg6[%c0_24, %c0_25] : memref<128x128xbf16, #tpu.memory_space<vmem>>, vector<128x128xbf16>
    %cst_26 = arith.constant dense<0.000000e+00> : vector<8x128xf32>
    %43 = tpu.matmul %41, %42, %cst_26 {dimension_numbers = #tpu.dot_dimension_numbers<[1], [0], [0], [1], [0, 0, 1, 1], [], []>} : vector<8x128xbf16>, vector<128x128xbf16>, vector<8x128xf32> -> vector<8x128xf32>
    %c0_27 = arith.constant 0 : index
    %c0_28 = arith.constant 0 : index
    %44 = vector.load %arg7[%c0_27, %c0_28] : memref<1x128xbf16, #tpu.memory_space<vmem>>, vector<1x128xbf16>
    %45 = arith.extf %44 : vector<1x128xbf16> to vector<1x128xf32>
    %46 = vector.broadcast %45 : vector<1x128xf32> to vector<8x128xf32>
    %47 = arith.addf %43, %46 : vector<8x128xf32>
    %c0_29 = arith.constant 0 : index
    %c0_30 = arith.constant 0 : index
    %48 = vector.load %arg8[%c0_29, %c0_30] : memref<8x128xf32, #tpu.memory_space<vmem>>, vector<8x128xf32>
    tpu.vector_store %arg8[%c0_29, %c0_30], %47 {strides = array<i32>} : memref<8x128xf32, #tpu.memory_space<vmem>>, vector<8x128xf32>,
    return
  }
  func.func @transform_0(%arg0: i32) -> (i32, i32) {
    %c0_i32 = arith.constant 0 : i32
    %c0_i32_0 = arith.constant 0 : i32
    return %arg0, %c0_i32 : i32, i32
  }
  func.func @transform_1(%arg0: i32) -> (i32, i32) {
    %c0_i32 = arith.constant 0 : i32
    %c0_i32_0 = arith.constant 0 : i32
    %c0_i32_1 = arith.constant 0 : i32
    return %c0_i32, %c0_i32_0 : i32, i32
  }
  func.func @transform_2(%arg0: i32) -> (i32, i32) {
    %c0_i32 = arith.constant 0 : i32
    %c0_i32_0 = arith.constant 0 : i32
    %c0_i32_1 = arith.constant 0 : i32
    return %c0_i32, %c0_i32_0 : i32, i32
  }
  func.func @transform_3(%arg0: i32) -> (i32, i32, i32) {
    %c0_i32 = arith.constant 0 : i32
    %c0_i32_0 = arith.constant 0 : i32
    %c0_i32_1 = arith.constant 0 : i32
    %c0_i32_2 = arith.constant 0 : i32
    return %c0_i32, %c0_i32_0, %c0_i32_1 : i32, i32, i32
  }
  func.func @transform_4(%arg0: i32) -> (i32, i32, i32) {
    %c0_i32 = arith.constant 0 : i32
    %c0_i32_0 = arith.constant 0 : i32
    %c0_i32_1 = arith.constant 0 : i32
    %c0_i32_2 = arith.constant 0 : i32
    return %c0_i32, %c0_i32_0, %c0_i32_1 : i32, i32, i32
  }
  func.func @transform_5(%arg0: i32) -> (i32, i32) {
    %c0_i32 = arith.constant 0 : i32
    %c0_i32_0 = arith.constant 0 : i32
    %c0_i32_1 = arith.constant 0 : i32
    return %c0_i32, %c0_i32_0 : i32, i32
  }
  func.func @transform_6(%arg0: i32) -> (i32, i32) {
    %c0_i32 = arith.constant 0 : i32
    %c0_i32_0 = arith.constant 0 : i32
    %c0_i32_1 = arith.constant 0 : i32
    return %c0_i32, %c0_i32_0 : i32, i32
  }
  func.func @transform_7(%arg0: i32) -> (i32, i32) {
    %c0_i32 = arith.constant 0 : i32
    %c0_i32_0 = arith.constant 0 : i32
    return %arg0, %c0_i32 : i32, i32
  }
}

module attributes {stable_mosaic.version = 11 : i64} {
  func.func @_fused_mlp_kernel(%arg0: i32, %arg1: memref<8x128xf32, #tpu.memory_space<vmem>>, %arg2: memref<128x128xbf16, #tpu.memory_space<vmem>>, %arg3: memref<1x128xbf16, #tpu.memory_space<vmem>>, %arg4: memref<2x128x128xbf16, #tpu.memory_space<vmem>>, %arg5: memref<2x1x128xbf16, #tpu.memory_space<vmem>>, %arg6: memref<128x128xbf16, #tpu.memory_space<vmem>>, %arg7: memref<1x128xbf16, #tpu.memory_space<vmem>>, %arg8: memref<8x128xf32, #tpu.memory_space<vmem>>) attributes {dimension_semantics = [#tpu.dimension_semantics<parallel>], iteration_bounds = array<i64: 1>, scalar_prefetch = 0 : i64, scratch_operands = 0 : i64, tpu.core_type = #tpu.core_type<tc>, window_params = [{transform_indices = @transform_0, window_bounds = array<i64: 8, 128>}, {pipeline_mode = #tpu.pipeline_mode<synchronous>, transform_indices = @transform_1, window_bounds = array<i64: 128, 128>}, {pipeline_mode = #tpu.pipeline_mode<synchronous>, transform_indices = @transform_2, window_bounds = array<i64: 1, 128>}, {pipeline_mode = #tpu.pipeline_mode<synchronous>, transform_indices = @transform_3, window_bounds = array<i64: 2, 128, 128>}, {pipeline_mode = #tpu.pipeline_mode<synchronous>, transform_indices = @transform_4, window_bounds = array<i64: 2, 1, 128>}, {pipeline_mode = #tpu.pipeline_mode<synchronous>, transform_indices = @transform_5, window_bounds = array<i64: 128, 128>}, {pipeline_mode = #tpu.pipeline_mode<synchronous>, transform_indices = @transform_6, window_bounds = array<i64: 1, 128>}, {transform_indices = @transform_7, window_bounds = array<i64: 8, 128>}]} {
    %c0 = arith.constant 0 : index
    %c0_0 = arith.constant 0 : index
    %0 = vector.load %arg1[%c0, %c0_0] : memref<8x128xf32, #tpu.memory_space<vmem>>, vector<8x128xf32>
    %1 = arith.truncf %0 : vector<8x128xf32> to vector<8x128xbf16>
    %c0_1 = arith.constant 0 : index
    %c0_2 = arith.constant 0 : index
    %2 = vector.load %arg2[%c0_1, %c0_2] : memref<128x128xbf16, #tpu.memory_space<vmem>>, vector<128x128xbf16>
    %cst = arith.constant dense<0.000000e+00> : vector<8x128xf32>
    %3 = tpu.matmul %1, %2, %cst {dimension_numbers = #tpu.dot_dimension_numbers<[1], [0], [0], [1], [0, 0, 1, 1], [], []>} : vector<8x128xbf16>, vector<128x128xbf16>, vector<8x128xf32> -> vector<8x128xf32>
    %c0_3 = arith.constant 0 : index
    %c0_4 = arith.constant 0 : index
    %4 = vector.load %arg3[%c0_3, %c0_4] : memref<1x128xbf16, #tpu.memory_space<vmem>>, vector<1x128xbf16>
    %5 = arith.extf %4 : vector<1x128xbf16> to vector<1x128xf32>
    %6 = vector.broadcast %5 : vector<1x128xf32> to vector<8x128xf32>
    %7 = arith.addf %3, %6 : vector<8x128xf32>
    %cst_5 = arith.constant 0.000000e+00 : f32
    %8 = vector.broadcast %cst_5 : f32 to vector<8x128xf32>
    %9 = arith.cmpf oge, %7, %8 : vector<8x128xf32>
    %cst_6 = arith.constant 0.00999999977 : f32
    %10 = vector.broadcast %cst_6 : f32 to vector<8x128xf32>
    %11 = arith.mulf %10, %7 : vector<8x128xf32>
    %12 = arith.select %9, %7, %11 : vector<8x128xi1>, vector<8x128xf32>
    %13 = arith.truncf %12 : vector<8x128xf32> to vector<8x128xbf16>
    %c0_7 = arith.constant 0 : index
    %c0_8 = arith.constant 0 : index
    %c0_9 = arith.constant 0 : index
    %14 = vector.load %arg4[%c0_7, %c0_8, %c0_9] : memref<2x128x128xbf16, #tpu.memory_space<vmem>>, vector<1x128x128xbf16>
    %15 = vector.shape_cast %14 : vector<1x128x128xbf16> to vector<128x128xbf16>
    %cst_10 = arith.constant dense<0.000000e+00> : vector<8x128xf32>
    %16 = tpu.matmul %13, %15, %cst_10 {dimension_numbers = #tpu.dot_dimension_numbers<[1], [0], [0], [1], [0, 0, 1, 1], [], []>} : vector<8x128xbf16>, vector<128x128xbf16>, vector<8x128xf32> -> vector<8x128xf32>
    %c0_11 = arith.constant 0 : index
    %c0_12 = arith.constant 0 : index
    %c0_13 = arith.constant 0 : index
    %17 = vector.load %arg5[%c0_11, %c0_12, %c0_13] : memref<2x1x128xbf16, #tpu.memory_space<vmem>>, vector<1x1x128xbf16>
    %18 = vector.shape_cast %17 : vector<1x1x128xbf16> to vector<1x128xbf16>
    %19 = arith.extf %18 : vector<1x128xbf16> to vector<1x128xf32>
    %20 = vector.broadcast %19 : vector<1x128xf32> to vector<8x128xf32>
    %21 = arith.addf %16, %20 : vector<8x128xf32>
    %cst_14 = arith.constant 0.000000e+00 : f32
    %22 = vector.broadcast %cst_14 : f32 to vector<8x128xf32>
    %23 = arith.cmpf oge, %21, %22 : vector<8x128xf32>
    %cst_15 = arith.constant 0.00999999977 : f32
    %24 = vector.broadcast %cst_15 : f32 to vector<8x128xf32>
    %25 = arith.mulf %24, %21 : vector<8x128xf32>
    %26 = arith.select %23, %21, %25 : vector<8x128xi1>, vector<8x128xf32>
    %27 = arith.truncf %26 : vector<8x128xf32> to vector<8x128xbf16>
    %c1 = arith.constant 1 : index
    %c0_16 = arith.constant 0 : index
    %c0_17 = arith.constant 0 : index
    %28 = vector.load %arg4[%c1, %c0_16, %c0_17] : memref<2x128x128xbf16, #tpu.memory_space<vmem>>, vector<1x128x128xbf16>
    %29 = vector.shape_cast %28 : vector<1x128x128xbf16> to vector<128x128xbf16>
    %cst_18 = arith.constant dense<0.000000e+00> : vector<8x128xf32>
    %30 = tpu.matmul %27, %29, %cst_18 {dimension_numbers = #tpu.dot_dimension_numbers<[1], [0], [0], [1], [0, 0, 1, 1], [], []>} : vector<8x128xbf16>, vector<128x128xbf16>, vector<8x128xf32> -> vector<8x128xf32>
    %c1_19 = arith.constant 1 : index
    %c0_20 = arith.constant 0 : index
    %c0_21 = arith.constant 0 : index
    %31 = vector.load %arg5[%c1_19, %c0_20, %c0_21] : memref<2x1x128xbf16, #tpu.memory_space<vmem>>, vector<1x1x128xbf16>
    %32 = vector.shape_cast %31 : vector<1x1x128xbf16> to vector<1x128xbf16>
    %33 = arith.extf %32 : vector<1x128xbf16> to vector<1x128xf32>
    %34 = vector.broadcast %33 : vector<1x128xf32> to vector<8x128xf32>
    %35 = arith.addf %30, %34 : vector<8x128xf32>
    %cst_22 = arith.constant 0.000000e+00 : f32
    %36 = vector.broadcast %cst_22 : f32 to vector<8x128xf32>
    %37 = arith.cmpf oge, %35, %36 : vector<8x128xf32>
    %cst_23 = arith.constant 0.00999999977 : f32
    %38 = vector.broadcast %cst_23 : f32 to vector<8x128xf32>
    %39 = arith.mulf %38, %35 : vector<8x128xf32>
    %40 = arith.select %37, %35, %39 : vector<8x128xi1>, vector<8x128xf32>
    %41 = arith.truncf %40 : vector<8x128xf32> to vector<8x128xbf16>
    %c0_24 = arith.constant 0 : index
    %c0_25 = arith.constant 0 : index
    %42 = vector.load %arg6[%c0_24, %c0_25] : memref<128x128xbf16, #tpu.memory_space<vmem>>, vector<128x128xbf16>
    %cst_26 = arith.constant dense<0.000000e+00> : vector<8x128xf32>
    %43 = tpu.matmul %41, %42, %cst_26 {dimension_numbers = #tpu.dot_dimension_numbers<[1], [0], [0], [1], [0, 0, 1, 1], [], []>} : vector<8x128xbf16>, vector<128x128xbf16>, vector<8x128xf32> -> vector<8x128xf32>
    %c0_27 = arith.constant 0 : index
    %c0_28 = arith.constant 0 : index
    %44 = vector.load %arg7[%c0_27, %c0_28] : memref<1x128xbf16, #tpu.memory_space<vmem>>, vector<1x128xbf16>
    %45 = arith.extf %44 : vector<1x128xbf16> to vector<1x128xf32>
    %46 = vector.broadcast %45 : vector<1x128xf32> to vector<8x128xf32>
    %47 = arith.addf %43, %46 : vector<8x128xf32>
    %c0_29 = arith.constant 0 : index
    %c0_30 = arith.constant 0 : index
    %48 = vector.load %arg8[%c0_29, %c0_30] : memref<8x128xf32, #tpu.memory_space<vmem>>, vector<8x128xf32>
    tpu.vector_store %arg8[%c0_29, %c0_30], %47 {strides = array<i32>} : memref<8x128xf32, #tpu.memory_space<vmem>>, vector<8x128xf32>,
    return
  }
  func.func @transform_0(%arg0: i32) -> (i32, i32) {
    %c0_i32 = arith.constant 0 : i32
    %c0_i32_0 = arith.constant 0 : i32
    return %arg0, %c0_i32 : i32, i32
  }
  func.func @transform_1(%arg0: i32) -> (i32, i32) {
    %c0_i32 = arith.constant 0 : i32
    %c0_i32_0 = arith.constant 0 : i32
    %c0_i32_1 = arith.constant 0 : i32
    return %c0_i32, %c0_i32_0 : i32, i32
  }
  func.func @transform_2(%arg0: i32) -> (i32, i32) {
    %c0_i32 = arith.constant 0 : i32
    %c0_i32_0 = arith.constant 0 : i32
    %c0_i32_1 = arith.constant 0 : i32
    return %c0_i32, %c0_i32_0 : i32, i32
  }
  func.func @transform_3(%arg0: i32) -> (i32, i32, i32) {
    %c0_i32 = arith.constant 0 : i32
    %c0_i32_0 = arith.constant 0 : i32
    %c0_i32_1 = arith.constant 0 : i32
    %c0_i32_2 = arith.constant 0 : i32
    return %c0_i32, %c0_i32_0, %c0_i32_1 : i32, i32, i32
  }
  func.func @transform_4(%arg0: i32) -> (i32, i32, i32) {
    %c0_i32 = arith.constant 0 : i32
    %c0_i32_0 = arith.constant 0 : i32
    %c0_i32_1 = arith.constant 0 : i32
    %c0_i32_2 = arith.constant 0 : i32
    return %c0_i32, %c0_i32_0, %c0_i32_1 : i32, i32, i32
  }
  func.func @transform_5(%arg0: i32) -> (i32, i32) {
    %c0_i32 = arith.constant 0 : i32
    %c0_i32_0 = arith.constant 0 : i32
    %c0_i32_1 = arith.constant 0 : i32
    return %c0_i32, %c0_i32_0 : i32, i32
  }
  func.func @transform_6(%arg0: i32) -> (i32, i32) {
    %c0_i32 = arith.constant 0 : i32
    %c0_i32_0 = arith.constant 0 : i32
    %c0_i32_1 = arith.constant 0 : i32
    return %c0_i32, %c0_i32_0 : i32, i32
  }
  func.func @transform_7(%arg0: i32) -> (i32, i32) {
    %c0_i32 = arith.constant 0 : i32
    %c0_i32_0 = arith.constant 0 : i32
    return %arg0, %c0_i32 : i32, i32
  }
}

</mosaic_0001>

<bundles_post_ra>
// kernel: basic_fully_connected_net.1
= control target key start
LH: loop header
LB: loop body
LE: loop exit
PB: predicated region body
PF: predicated region fallthrough
CT: control target
= control target key end

     0   :  { %12 = vsyncpa [#allocation3], 0  ;;  %s998_s0 = inlined_call_operand.vmem [shape: f32[8,128], index: 0, kind: input, shape index: {}]   ;;  %s999_s1 = inlined_call_operand.hbm [shape: bf16[128,128], index: 1, kind: input, shape index: {}]   ;;  %s1000_s2 = inlined_call_operand.vmem [shape: bf16[1,128], index: 2, kind: input, shape index: {}]   ;;  %s1001_s3 = inlined_call_operand.hbm [shape: bf16[2,128,128], index: 3, kind: input, shape index: {}]   ;;  %s1002_s4 = inlined_call_operand.vmem [shape: bf16[2,1,128], index: 4, kind: input, shape index: {}]   ;;  %s1003_s5 = inlined_call_operand.hbm [shape: bf16[128,128], index: 5, kind: input, shape index: {}]   ;;  %s1004_s6 = inlined_call_operand.vmem [shape: bf16[1,128], index: 6, kind: input, shape index: {}]   ;;  %s1005_s7 = inlined_call_operand.hbm [shape: f32[8,128], index: 7, kind: output, shape index: {}]  }
   0x1   :  { %13 = vsyncpa [#allocation6], 0 }
   0x2   :  { %14 = vsyncpa [#allocation4], 0  ;;  %s825_s24 = smov [#allocation5]   ;;  %s826_s26 = smov [#allocation2]  }
   0x3   :  { %s36_s25 = sshll.u32 %s825_s24, 4  ;;  %s22_s27 = sshll.u32 %s826_s26, 4  ;;  %s37_s25 = int_to_ptr.vmem [resolvable:$true] %s36_s25  ;;  %s873_s27 = int_to_ptr.vmem [resolvable:$true] %s22_s27 }
   0x4   :  { %s731_s30 = scalar_lea.hbm %s1001_s3, 2048 }
   0x5   :  { %p732_p0 = scmp.ne.s32.totalorder %s1001_s3, %s731_s30  ;;  %p735_p1 = scmp.lt.u32.totalorder %s731_s30, %s1001_s3 }
   0x7   :  { %p737_p2 = pnand %p735_p1, %p732_p0 }
   0x9   :  { %740 = shalt.err (!%p737_p2)
}
   0xa   :  { %s741_s12 = scalar_lea.vmem %s37_s25, 2048  ;;  %p746_p4 = scmp.lt.s32.totalorder %s37_s25, %s37_s25 }
   0xb   :  { %p742_p3 = scmp.ne.s32.totalorder %s37_s25, %s741_s12  ;;  %p747_p5 = scmp.lt.s32.totalorder %s741_s12, %s741_s12 }
   0xd   :  { %p748_p6 = por %p747_p5, %p746_p4 }
   0xf   :  { %p749_p7 = pnand %p748_p6, %p742_p3 }
  0x11   :  { %752 = shalt.err (!%p749_p7)
}
  0x12   :  { %s827_s13 = smov 64   ;;  %s828_s14 = smov 4  }
  0x13   :  { %42 = dma.hbm_to_vmem [thread:$0]  %s1001_s3, 2048, %s37_s25, [#allocation6], %s827_s13, %s827_s13, %s828_s14  }
  0x14   :  { %s753_s19 = scalar_lea.hbm %s999_s1, 1024 }
  0x15   :  { %p754_p8 = scmp.ne.s32.totalorder %s999_s1, %s753_s19  ;;  %p757_p9 = scmp.lt.u32.totalorder %s753_s19, %s999_s1 }
  0x17   :  { %p759_p10 = pnand %p757_p9, %p754_p8 }
  0x19   :  { %762 = shalt.err (!%p759_p10)
}
  0x1a   :  { %s763_s24 = scalar_lea.vmem %s873_s27, 1024  ;;  %p768_p12 = scmp.lt.s32.totalorder %s873_s27, %s873_s27 }
  0x1b   :  { %p764_p11 = scmp.ne.s32.totalorder %s873_s27, %s763_s24  ;;  %p769_p13 = scmp.lt.s32.totalorder %s763_s24, %s763_s24 }
  0x1d   :  { %p770_p0 = por %p769_p13, %p768_p12 }
  0x1f   :  { %p771_p1 = pnand %p770_p0, %p764_p11 }
  0x21   :  { %774 = shalt.err (!%p771_p1)
}
  0x22   :  { %28 = dma.hbm_to_vmem [thread:$0]  %s999_s1, 1024, %s873_s27, [#allocation3], %s827_s13, %s827_s13, %s828_s14  }
  0x23   :  { %s829_s26 = smov [#allocation7]   ;;  %s775_s8 = scalar_lea.hbm %s1003_s5, 1024 }
  0x24   :  { %s50_s28 = sshll.u32 %s829_s26, 4  ;;  %p776_p2 = scmp.ne.s32.totalorder %s1003_s5, %s775_s8  ;;  %s51_s28 = int_to_ptr.vmem [resolvable:$true] %s50_s28 }
  0x25   :  { %p779_p3 = scmp.lt.u32.totalorder %s775_s8, %s1003_s5 }
  0x27   :  { %p781_p4 = pnand %p779_p3, %p776_p2 }
  0x29   :  { %784 = shalt.err (!%p781_p4)
}
  0x2a   :  { %s785_s15 = scalar_lea.vmem %s51_s28, 1024  ;;  %p790_p6 = scmp.lt.s32.totalorder %s51_s28, %s51_s28 }
  0x2b   :  { %p786_p5 = scmp.ne.s32.totalorder %s51_s28, %s785_s15  ;;  %p791_p7 = scmp.lt.s32.totalorder %s785_s15, %s785_s15 }
  0x2d   :  { %p792_p8 = por %p791_p7, %p790_p6 }
  0x2f   :  { %p793_p9 = pnand %p792_p8, %p786_p5 }
  0x31   :  { %796 = shalt.err (!%p793_p9)
}
  0x32   :  { %56 = dma.hbm_to_vmem [thread:$0]  %s1003_s5, 1024, %s51_s28, [#allocation6], %s827_s13, %s827_s13, %s828_s14  }
  0x33   :  { %819 = dma.done.wait [#allocation3], 1024  }
  0x34   :  { %820 = vsyncadd [#allocation3], 4294966272 }
  0x35   :  { %821 = dma.done.wait [#allocation6], 3072  }
  0x36   :  { %822 = vsyncadd [#allocation6], 4294964224  ;;  %v830_v0 = vmov 0.0   ;;  %vm831_vm0 = vmmov 0   ;;  %v699_v1 = vld [vmem:[#allocation2] sm:$0xff]   ;;  %v700_v2 = vld [vmem:[#allocation2 + $0x8] sm:$0xff]   ;;  %v89_v25 = vlaneseq }
  0x37   :  { %611 = vmatprep.subr.bf16.mxu0 %v830_v0  ;;  %627 = vmatprep.mubr.msk.bf16.mxu0 %vm831_vm0, %v830_v0  ;;  %v701_v3 = vld [vmem:[#allocation2 + $0x10] sm:$0xff]   ;;  %v707_v4 = vld [vmem:[#allocation5] sm:$0xff]   ;;  %v702_v5 = vld [vmem:[#allocation2 + $0x18] sm:$0xff]  }
  0x38   :  { %631 = vmatprep.subr.bf16.mxu1 %v830_v0  ;;  %647 = vmatprep.mubr.msk.bf16.mxu1 %vm831_vm0, %v830_v0  ;;  %v708_v6 = vld [vmem:[#allocation5 + $0x8] sm:$0xff]   ;;  %v703_v7 = vld [vmem:[#allocation2 + $0x20] sm:$0xff]   ;;  %v709_v8 = vld [vmem:[#allocation5 + $0x10] sm:$0xff]   ;;  %v90_v26 = vshrl.u32 %v89_v25, 7 }
  0x39   :  { %612 = vmatpush3.bf16.msra.mxu0 %v699_v1  ;;  %632 = vmatpush3.bf16.msra.mxu1 %v707_v4  ;;  %v704_v9 = vld [vmem:[#allocation2 + $0x28] sm:$0xff]   ;;  %v710_v10 = vld [vmem:[#allocation5 + $0x18] sm:$0xff]   ;;  %v705_v11 = vld [vmem:[#allocation2 + $0x30] sm:$0xff]  }
  0x3a   :  { %613 = vmatprep.subr.bf16.mxu0 %v830_v0  ;;  %633 = vmatprep.subr.bf16.mxu1 %v830_v0  ;;  %v711_v12 = vld [vmem:[#allocation5 + $0x20] sm:$0xff]   ;;  %v706_v13 = vld [vmem:[#allocation2 + $0x38] sm:$0xff]   ;;  %v712_v15 = vld [vmem:[#allocation5 + $0x28] sm:$0xff]   ;;  %v961_v29 = vsub.s32 0, %v90_v26 }
  0x3b   :  { %v69_v14 = vld [vmem:[%s998_s0] sm:$0xff]  ;;  %v713_v17 = vld [vmem:[#allocation5 + $0x30] sm:$0xff]   ;;  %v714_v18 = vld [vmem:[#allocation5 + $0x38] sm:$0xff]  }
  0x3c   :  { %v70_v16 = vpack.c.bf16 %v69_v14, %v69_v14  ;;  %v715_v19 = vld [vmem:[#allocation5 + $0x40] sm:$0xff]   ;;  %v716_v20 = vld [vmem:[#allocation5 + $0x48] sm:$0xff]   ;;  %v717_v21 = vld [vmem:[#allocation5 + $0x50] sm:$0xff]  }
  0x3d   :  { %614 = vmatpush3.bf16.msra.mxu0 %v700_v2  ;;  %634 = vmatpush3.bf16.msra.mxu1 %v708_v6  ;;  %v718_v22 = vld [vmem:[#allocation5 + $0x58] sm:$0xff]   ;;  %v719_v23 = vld [vmem:[#allocation5 + $0x60] sm:$0xff]   ;;  %v720_v24 = vld [vmem:[#allocation5 + $0x68] sm:$0xff]  }
  0x3e   :  { %615 = vmatprep.subr.bf16.mxu0 %v830_v0  ;;  %635 = vmatprep.subr.bf16.mxu1 %v830_v0  ;;  %v87_v27 = vld [vmem:[%s1000_s2] sm:$0x1]  ;;  %v721_v39 = vld [vmem:[#allocation5 + $0x70] sm:$0xff]   ;;  %v722_v40 = vld [vmem:[#allocation5 + $0x78] sm:$0xff]  }
  0x3f   :  { %v88_v28 = vunpack.c.l.bf16 %v87_v27  ;;  %v723_v41 = vld [vmem:[#allocation7] sm:$0xff]   ;;  %v724_v42 = vld [vmem:[#allocation7 + $0x8] sm:$0xff]   ;;  %v725_v43 = vld [vmem:[#allocation7 + $0x10] sm:$0xff]  }
  0x40   :  { %v726_v44 = vld [vmem:[#allocation7 + $0x18] sm:$0xff]   ;;  %v727_v45 = vld [vmem:[#allocation7 + $0x20] sm:$0xff]   ;;  %v728_v46 = vld [vmem:[#allocation7 + $0x28] sm:$0xff]  }
  0x41   :  { %616 = vmatpush3.bf16.msra.mxu0 %v701_v3  ;;  %636 = vmatpush3.bf16.msra.mxu1 %v709_v8  ;;  %v92_v30 = vrot.slane %v88_v28, %v961_v29  ;;  %v201_v47 = vld [vmem:[%s1002_s4] sm:$0x1]  ;;  %v729_v58 = vld [vmem:[#allocation7 + $0x30] sm:$0xff]   ;;  %v730_v59 = vld [vmem:[#allocation7 + $0x38] sm:$0xff]  }
  0x42   :  { %617 = vmatprep.subr.bf16.mxu0 %v830_v0  ;;  %637 = vmatprep.subr.bf16.mxu1 %v830_v0  ;;  %v202_v48 = vunpack.c.l.bf16 %v201_v47  ;;  %v558_v60 = vld [vmem:[%s1002_s4 + $0x1] sm:$0x1]  ;;  %s832_s4 = smov [#allocation8]  }
  0x43   :  { %v318_v61 = vunpack.c.l.bf16 %v558_v60  ;;  %s532_s21 = sshll.u32 %s832_s4, 4  ;;  %s533_s21 = int_to_ptr.vmem [resolvable:$true] %s532_s21 }
  0x44   :  { %v206_v49 = vrot.slane %v202_v48, %v961_v29  ;;  %s797_s22 = scalar_lea.vmem %s533_s21, 128  ;;  %p802_p11 = scmp.lt.s32.totalorder %s533_s21, %s533_s21 }
  0x45   :  { %618 = vmatpush3.bf16.msra.mxu0 %v702_v5  ;;  %638 = vmatpush3.bf16.msra.mxu1 %v710_v10  ;;  %v322_v62 = vrot.slane %v318_v61, %v961_v29  ;;  %p798_p10 = scmp.ne.s32.totalorder %s533_s21, %s797_s22  ;;  %p803_p12 = scmp.lt.s32.totalorder %s797_s22, %s797_s22 }
  0x46   :  { %619 = vmatprep.subr.bf16.mxu0 %v830_v0  ;;  %639 = vmatprep.subr.bf16.mxu1 %v830_v0 }
  0x47   :  { %p804_p13 = por %p803_p12, %p802_p11 }
  0x49   :  { %620 = vmatpush3.bf16.msra.mxu0 %v703_v7  ;;  %640 = vmatpush3.bf16.msra.mxu1 %v711_v12  ;;  %p805_p0 = pnand %p804_p13, %p798_p10 }
  0x4a   :  { %621 = vmatprep.subr.bf16.mxu0 %v830_v0  ;;  %641 = vmatprep.subr.bf16.mxu1 %v830_v0 }
  0x4d   :  { %622 = vmatpush3.bf16.msra.mxu0 %v704_v9  ;;  %642 = vmatpush3.bf16.msra.mxu1 %v712_v15 }
  0x4e   :  { %623 = vmatprep.subr.bf16.mxu0 %v830_v0  ;;  %643 = vmatprep.subr.bf16.mxu1 %v830_v0 }
  0x51   :  { %624 = vmatpush3.bf16.msra.mxu0 %v705_v11  ;;  %644 = vmatpush3.bf16.msra.mxu1 %v713_v17 }
  0x52   :  { %625 = vmatprep.subr.bf16.mxu0 %v830_v0  ;;  %645 = vmatprep.subr.bf16.mxu1 %v830_v0 }
  0x55   :  { %626 = vmatpush3.bf16.msra.mxu0 %v706_v13  ;;  %646 = vmatpush3.bf16.msra.mxu1 %v714_v18 }
  0x56   :  { %651 = vmatprep.subr.bf16.mxu0 %v830_v0  ;;  %671 = vmatprep.subr.bf16.mxu1 %v830_v0 }
  0x58   :  { %628 = vmatmul.mubr.bf16.vlgmr.msra.gmra.mrb[0].mxu0 %v70_v16 }
  0x59   :  { %667 = vmatprep.mubr.msk.bf16.mxu0 %vm831_vm0, %v830_v0  ;;  %652 = vmatpush3.bf16.msra.mxu0 %v715_v19 }
  0x5a   :  { %653 = vmatprep.subr.bf16.mxu0 %v830_v0 }
  0x5d   :  { %654 = vmatpush3.bf16.msra.mxu0 %v716_v20 }
  0x5e   :  { %655 = vmatprep.subr.bf16.mxu0 %v830_v0 }
  0x61   :  { %656 = vmatpush3.bf16.msra.mxu0 %v717_v21 }
  0x62   :  { %657 = vmatprep.subr.bf16.mxu0 %v830_v0 }
  0x65   :  { %658 = vmatpush3.bf16.msra.mxu0 %v718_v22 }
  0x66   :  { %659 = vmatprep.subr.bf16.mxu0 %v830_v0 }
  0x69   :  { %660 = vmatpush3.bf16.msra.mxu0 %v719_v23 }
  0x6a   :  { %661 = vmatprep.subr.bf16.mxu0 %v830_v0 }
  0x6d   :  { %662 = vmatpush3.bf16.msra.mxu0 %v720_v24 }
  0x6e   :  { %663 = vmatprep.subr.bf16.mxu0 %v830_v0 }
  0x71   :  { %664 = vmatpush3.bf16.msra.mxu0 %v721_v39 }
  0x72   :  { %665 = vmatprep.subr.bf16.mxu0 %v830_v0 }
  0x75   :  { %666 = vmatpush3.bf16.msra.mxu0 %v722_v40 }
 0x12b   :  { %v175_v31 = vpop.f32.mrb[0].mxu0 }
 0x12c   :  { %v176_v32 = vadd.f32 %v175_v31, %v92_v30  ;;  %v629_v33 = vpop.f32.mrb[1].mxu0 }
 0x12d   :  { %v178_v34 = vpop.f32.mrb[2].mxu0 }
 0x12e   :  { %vm181_vm1 = vcmp.ge.f32.partialorder %v176_v32, 0.0  ;;  %v182_v35 = vmul.f32 0.01, %v176_v32  ;;  %v630_v36 = vpop.f32.mrb[3].mxu0 }
 0x130   :  { %v183_v37 = vsel %vm181_vm1, %v176_v32, %v182_v35 }
 0x131   :  { %v184_v38 = vpack.c.bf16 %v183_v37, %v183_v37 }
 0x133   :  { %648 = vmatmul.mubr.bf16.vlgmr.msra.gmra.mrb[0].mxu1 %v184_v38 }
 0x134   :  { %687 = vmatprep.mubr.msk.bf16.mxu1 %vm831_vm0, %v830_v0  ;;  %672 = vmatpush3.bf16.msra.mxu1 %v723_v41 }
 0x135   :  { %673 = vmatprep.subr.bf16.mxu1 %v830_v0 }
 0x138   :  { %674 = vmatpush3.bf16.msra.mxu1 %v724_v42 }
 0x139   :  { %675 = vmatprep.subr.bf16.mxu1 %v830_v0 }
 0x13c   :  { %676 = vmatpush3.bf16.msra.mxu1 %v725_v43 }
 0x13d   :  { %677 = vmatprep.subr.bf16.mxu1 %v830_v0 }
 0x140   :  { %678 = vmatpush3.bf16.msra.mxu1 %v726_v44 }
 0x141   :  { %679 = vmatprep.subr.bf16.mxu1 %v830_v0 }
 0x144   :  { %680 = vmatpush3.bf16.msra.mxu1 %v727_v45 }
 0x145   :  { %681 = vmatprep.subr.bf16.mxu1 %v830_v0 }
 0x148   :  { %682 = vmatpush3.bf16.msra.mxu1 %v728_v46 }
 0x149   :  { %683 = vmatprep.subr.bf16.mxu1 %v830_v0 }
 0x14c   :  { %684 = vmatpush3.bf16.msra.mxu1 %v729_v58 }
 0x14d   :  { %685 = vmatprep.subr.bf16.mxu1 %v830_v0  ;;  %v431_v0 = vld [vmem:[%s1004_s6] sm:$0x1] }
 0x14e   :  { %v432_v8 = vunpack.c.l.bf16 %v431_v0 }
 0x150   :  { %686 = vmatpush3.bf16.msra.mxu1 %v730_v59  ;;  %v436_v9 = vrot.slane %v432_v8, %v961_v29 }
 0x206   :  { %v289_v50 = vpop.f32.mrb[0].mxu1 }
 0x207   :  { %v290_v51 = vadd.f32 %v289_v50, %v206_v49  ;;  %v649_v52 = vpop.f32.mrb[1].mxu1 }
 0x208   :  { %v292_v53 = vpop.f32.mrb[2].mxu1 }
 0x209   :  { %vm295_vm2 = vcmp.ge.f32.partialorder %v290_v51, 0.0  ;;  %v296_v54 = vmul.f32 0.01, %v290_v51  ;;  %v650_v55 = vpop.f32.mrb[3].mxu1 }
 0x20b   :  { %v297_v56 = vsel %vm295_vm2, %v290_v51, %v296_v54 }
 0x20c   :  { %v298_v57 = vpack.c.bf16 %v297_v56, %v297_v56 }
 0x20e   :  { %668 = vmatmul.mubr.bf16.vlgmr.msra.gmra.mrb[4].mxu0 %v298_v57 }
 0x2e1   :  { %v405_v63 = vpop.f32.mrb[4].mxu0 }
 0x2e2   :  { %v406_v1 = vadd.f32 %v405_v63, %v322_v62  ;;  %v669_v2 = vpop.f32.mrb[5].mxu0 }
 0x2e3   :  { %v408_v3 = vpop.f32.mrb[6].mxu0 }
 0x2e4   :  { %vm411_vm3 = vcmp.ge.f32.partialorder %v406_v1, 0.0  ;;  %v412_v4 = vmul.f32 0.01, %v406_v1  ;;  %v670_v5 = vpop.f32.mrb[7].mxu0 }
 0x2e6   :  { %v413_v6 = vsel %vm411_vm3, %v406_v1, %v412_v4 }
 0x2e7   :  { %v414_v7 = vpack.c.bf16 %v413_v6, %v413_v6 }
 0x2e9   :  { %688 = vmatmul.mubr.bf16.vlgmr.msra.gmra.mrb[4].mxu1 %v414_v7 }
 0x3bc   :  { %v519_v10 = vpop.f32.mrb[4].mxu1 }
 0x3bd   :  { %v520_v11 = vadd.f32 %v519_v10, %v436_v9  ;;  %v689_v12 = vpop.f32.mrb[5].mxu1 }
 0x3be   :  { %v522_v13 = vpop.f32.mrb[6].mxu1 }
 0x3bf   :  { %525 = vst [vmem:[#allocation8] sm:$0xff] %v520_v11  ;;  %v690_v14 = vpop.f32.mrb[7].mxu1 }
 0x3c0   :  { %808 = shalt.err (!%p805_p0)
}
 0x3c1   :  { %s809_s24 = scalar_lea.hbm %s1005_s7, 128 }
 0x3c2   :  { %p810_p1 = scmp.ne.s32.totalorder %s1005_s7, %s809_s24  ;;  %p813_p2 = scmp.lt.u32.totalorder %s809_s24, %s1005_s7 }
 0x3c4   :  { %p815_p3 = pnand %p813_p2, %p810_p1 }
 0x3c6   :  { %818 = shalt.err (!%p815_p3)
}
 0x3c7   :  { %535 = dma.vmem_to_hbm [thread:$0]  %s533_s21, 128, %s1005_s7, [#allocation4]  }
 0x3c8   :  { %823 = dma.done.wait [#allocation4], 128  }
 0x3c9   :  { %824 = vsyncadd [#allocation4], 4294967168 }
 0x3ca   :  { %539 = vsyncpa [#allocation3], 1 }
 0x3cb   :  { %540 = vsyncpa [#allocation6], 1 }
 0x3cc   :  { %541 = vsyncpa [#allocation4], 1 }

// kernel: basic_fully_connected_net.1
= control target key start
LH: loop header
LB: loop body
LE: loop exit
PB: predicated region body
PF: predicated region fallthrough
CT: control target
= control target key end

     0   :  { %12 = vsyncpa [#allocation3], 0  ;;  %s998_s0 = inlined_call_operand.vmem [shape: f32[8,128], index: 0, kind: input, shape index: {}]   ;;  %s999_s1 = inlined_call_operand.hbm [shape: bf16[128,128], index: 1, kind: input, shape index: {}]   ;;  %s1000_s2 = inlined_call_operand.vmem [shape: bf16[1,128], index: 2, kind: input, shape index: {}]   ;;  %s1001_s3 = inlined_call_operand.hbm [shape: bf16[2,128,128], index: 3, kind: input, shape index: {}]   ;;  %s1002_s4 = inlined_call_operand.vmem [shape: bf16[2,1,128], index: 4, kind: input, shape index: {}]   ;;  %s1003_s5 = inlined_call_operand.hbm [shape: bf16[128,128], index: 5, kind: input, shape index: {}]   ;;  %s1004_s6 = inlined_call_operand.vmem [shape: bf16[1,128], index: 6, kind: input, shape index: {}]   ;;  %s1005_s7 = inlined_call_operand.hbm [shape: f32[8,128], index: 7, kind: output, shape index: {}]  }
   0x1   :  { %13 = vsyncpa [#allocation6], 0 }
   0x2   :  { %14 = vsyncpa [#allocation4], 0  ;;  %s825_s24 = smov [#allocation5]   ;;  %s826_s26 = smov [#allocation2]  }
   0x3   :  { %s36_s25 = sshll.u32 %s825_s24, 4  ;;  %s22_s27 = sshll.u32 %s826_s26, 4  ;;  %s37_s25 = int_to_ptr.vmem [resolvable:$true] %s36_s25  ;;  %s873_s27 = int_to_ptr.vmem [resolvable:$true] %s22_s27 }
   0x4   :  { %s731_s30 = scalar_lea.hbm %s1001_s3, 2048 }
   0x5   :  { %p732_p0 = scmp.ne.s32.totalorder %s1001_s3, %s731_s30  ;;  %p735_p1 = scmp.lt.u32.totalorder %s731_s30, %s1001_s3 }
   0x7   :  { %p737_p2 = pnand %p735_p1, %p732_p0 }
   0x9   :  { %740 = shalt.err (!%p737_p2)
}
   0xa   :  { %s741_s12 = scalar_lea.vmem %s37_s25, 2048  ;;  %p746_p4 = scmp.lt.s32.totalorder %s37_s25, %s37_s25 }
   0xb   :  { %p742_p3 = scmp.ne.s32.totalorder %s37_s25, %s741_s12  ;;  %p747_p5 = scmp.lt.s32.totalorder %s741_s12, %s741_s12 }
   0xd   :  { %p748_p6 = por %p747_p5, %p746_p4 }
   0xf   :  { %p749_p7 = pnand %p748_p6, %p742_p3 }
  0x11   :  { %752 = shalt.err (!%p749_p7)
}
  0x12   :  { %s827_s13 = smov 64   ;;  %s828_s14 = smov 4  }
  0x13   :  { %42 = dma.hbm_to_vmem [thread:$0]  %s1001_s3, 2048, %s37_s25, [#allocation6], %s827_s13, %s827_s13, %s828_s14  }
  0x14   :  { %s753_s19 = scalar_lea.hbm %s999_s1, 1024 }
  0x15   :  { %p754_p8 = scmp.ne.s32.totalorder %s999_s1, %s753_s19  ;;  %p757_p9 = scmp.lt.u32.totalorder %s753_s19, %s999_s1 }
  0x17   :  { %p759_p10 = pnand %p757_p9, %p754_p8 }
  0x19   :  { %762 = shalt.err (!%p759_p10)
}
  0x1a   :  { %s763_s24 = scalar_lea.vmem %s873_s27, 1024  ;;  %p768_p12 = scmp.lt.s32.totalorder %s873_s27, %s873_s27 }
  0x1b   :  { %p764_p11 = scmp.ne.s32.totalorder %s873_s27, %s763_s24  ;;  %p769_p13 = scmp.lt.s32.totalorder %s763_s24, %s763_s24 }
  0x1d   :  { %p770_p0 = por %p769_p13, %p768_p12 }
  0x1f   :  { %p771_p1 = pnand %p770_p0, %p764_p11 }
  0x21   :  { %774 = shalt.err (!%p771_p1)
}
  0x22   :  { %28 = dma.hbm_to_vmem [thread:$0]  %s999_s1, 1024, %s873_s27, [#allocation3], %s827_s13, %s827_s13, %s828_s14  }
  0x23   :  { %s829_s26 = smov [#allocation7]   ;;  %s775_s8 = scalar_lea.hbm %s1003_s5, 1024 }
  0x24   :  { %s50_s28 = sshll.u32 %s829_s26, 4  ;;  %p776_p2 = scmp.ne.s32.totalorder %s1003_s5, %s775_s8  ;;  %s51_s28 = int_to_ptr.vmem [resolvable:$true] %s50_s28 }
  0x25   :  { %p779_p3 = scmp.lt.u32.totalorder %s775_s8, %s1003_s5 }
  0x27   :  { %p781_p4 = pnand %p779_p3, %p776_p2 }
  0x29   :  { %784 = shalt.err (!%p781_p4)
}
  0x2a   :  { %s785_s15 = scalar_lea.vmem %s51_s28, 1024  ;;  %p790_p6 = scmp.lt.s32.totalorder %s51_s28, %s51_s28 }
  0x2b   :  { %p786_p5 = scmp.ne.s32.totalorder %s51_s28, %s785_s15  ;;  %p791_p7 = scmp.lt.s32.totalorder %s785_s15, %s785_s15 }
  0x2d   :  { %p792_p8 = por %p791_p7, %p790_p6 }
  0x2f   :  { %p793_p9 = pnand %p792_p8, %p786_p5 }
  0x31   :  { %796 = shalt.err (!%p793_p9)
}
  0x32   :  { %56 = dma.hbm_to_vmem [thread:$0]  %s1003_s5, 1024, %s51_s28, [#allocation6], %s827_s13, %s827_s13, %s828_s14  }
  0x33   :  { %819 = dma.done.wait [#allocation3], 1024  }
  0x34   :  { %820 = vsyncadd [#allocation3], 4294966272 }
  0x35   :  { %821 = dma.done.wait [#allocation6], 3072  }
  0x36   :  { %822 = vsyncadd [#allocation6], 4294964224  ;;  %v830_v0 = vmov 0.0   ;;  %vm831_vm0 = vmmov 0   ;;  %v699_v1 = vld [vmem:[#allocation2] sm:$0xff]   ;;  %v700_v2 = vld [vmem:[#allocation2 + $0x8] sm:$0xff]   ;;  %v89_v25 = vlaneseq }
  0x37   :  { %611 = vmatprep.subr.bf16.mxu0 %v830_v0  ;;  %627 = vmatprep.mubr.msk.bf16.mxu0 %vm831_vm0, %v830_v0  ;;  %v701_v3 = vld [vmem:[#allocation2 + $0x10] sm:$0xff]   ;;  %v707_v4 = vld [vmem:[#allocation5] sm:$0xff]   ;;  %v702_v5 = vld [vmem:[#allocation2 + $0x18] sm:$0xff]  }
  0x38   :  { %631 = vmatprep.subr.bf16.mxu1 %v830_v0  ;;  %647 = vmatprep.mubr.msk.bf16.mxu1 %vm831_vm0, %v830_v0  ;;  %v708_v6 = vld [vmem:[#allocation5 + $0x8] sm:$0xff]   ;;  %v703_v7 = vld [vmem:[#allocation2 + $0x20] sm:$0xff]   ;;  %v709_v8 = vld [vmem:[#allocation5 + $0x10] sm:$0xff]   ;;  %v90_v26 = vshrl.u32 %v89_v25, 7 }
  0x39   :  { %612 = vmatpush3.bf16.msra.mxu0 %v699_v1  ;;  %632 = vmatpush3.bf16.msra.mxu1 %v707_v4  ;;  %v704_v9 = vld [vmem:[#allocation2 + $0x28] sm:$0xff]   ;;  %v710_v10 = vld [vmem:[#allocation5 + $0x18] sm:$0xff]   ;;  %v705_v11 = vld [vmem:[#allocation2 + $0x30] sm:$0xff]  }
  0x3a   :  { %613 = vmatprep.subr.bf16.mxu0 %v830_v0  ;;  %633 = vmatprep.subr.bf16.mxu1 %v830_v0  ;;  %v711_v12 = vld [vmem:[#allocation5 + $0x20] sm:$0xff]   ;;  %v706_v13 = vld [vmem:[#allocation2 + $0x38] sm:$0xff]   ;;  %v712_v15 = vld [vmem:[#allocation5 + $0x28] sm:$0xff]   ;;  %v961_v29 = vsub.s32 0, %v90_v26 }
  0x3b   :  { %v69_v14 = vld [vmem:[%s998_s0] sm:$0xff]  ;;  %v713_v17 = vld [vmem:[#allocation5 + $0x30] sm:$0xff]   ;;  %v714_v18 = vld [vmem:[#allocation5 + $0x38] sm:$0xff]  }
  0x3c   :  { %v70_v16 = vpack.c.bf16 %v69_v14, %v69_v14  ;;  %v715_v19 = vld [vmem:[#allocation5 + $0x40] sm:$0xff]   ;;  %v716_v20 = vld [vmem:[#allocation5 + $0x48] sm:$0xff]   ;;  %v717_v21 = vld [vmem:[#allocation5 + $0x50] sm:$0xff]  }
  0x3d   :  { %614 = vmatpush3.bf16.msra.mxu0 %v700_v2  ;;  %634 = vmatpush3.bf16.msra.mxu1 %v708_v6  ;;  %v718_v22 = vld [vmem:[#allocation5 + $0x58] sm:$0xff]   ;;  %v719_v23 = vld [vmem:[#allocation5 + $0x60] sm:$0xff]   ;;  %v720_v24 = vld [vmem:[#allocation5 + $0x68] sm:$0xff]  }
  0x3e   :  { %615 = vmatprep.subr.bf16.mxu0 %v830_v0  ;;  %635 = vmatprep.subr.bf16.mxu1 %v830_v0  ;;  %v87_v27 = vld [vmem:[%s1000_s2] sm:$0x1]  ;;  %v721_v39 = vld [vmem:[#allocation5 + $0x70] sm:$0xff]   ;;  %v722_v40 = vld [vmem:[#allocation5 + $0x78] sm:$0xff]  }
  0x3f   :  { %v88_v28 = vunpack.c.l.bf16 %v87_v27  ;;  %v723_v41 = vld [vmem:[#allocation7] sm:$0xff]   ;;  %v724_v42 = vld [vmem:[#allocation7 + $0x8] sm:$0xff]   ;;  %v725_v43 = vld [vmem:[#allocation7 + $0x10] sm:$0xff]  }
  0x40   :  { %v726_v44 = vld [vmem:[#allocation7 + $0x18] sm:$0xff]   ;;  %v727_v45 = vld [vmem:[#allocation7 + $0x20] sm:$0xff]   ;;  %v728_v46 = vld [vmem:[#allocation7 + $0x28] sm:$0xff]  }
  0x41   :  { %616 = vmatpush3.bf16.msra.mxu0 %v701_v3  ;;  %636 = vmatpush3.bf16.msra.mxu1 %v709_v8  ;;  %v92_v30 = vrot.slane %v88_v28, %v961_v29  ;;  %v201_v47 = vld [vmem:[%s1002_s4] sm:$0x1]  ;;  %v729_v58 = vld [vmem:[#allocation7 + $0x30] sm:$0xff]   ;;  %v730_v59 = vld [vmem:[#allocation7 + $0x38] sm:$0xff]  }
  0x42   :  { %617 = vmatprep.subr.bf16.mxu0 %v830_v0  ;;  %637 = vmatprep.subr.bf16.mxu1 %v830_v0  ;;  %v202_v48 = vunpack.c.l.bf16 %v201_v47  ;;  %v558_v60 = vld [vmem:[%s1002_s4 + $0x1] sm:$0x1]  ;;  %s832_s4 = smov [#allocation8]  }
  0x43   :  { %v318_v61 = vunpack.c.l.bf16 %v558_v60  ;;  %s532_s21 = sshll.u32 %s832_s4, 4  ;;  %s533_s21 = int_to_ptr.vmem [resolvable:$true] %s532_s21 }
  0x44   :  { %v206_v49 = vrot.slane %v202_v48, %v961_v29  ;;  %s797_s22 = scalar_lea.vmem %s533_s21, 128  ;;  %p802_p11 = scmp.lt.s32.totalorder %s533_s21, %s533_s21 }
  0x45   :  { %618 = vmatpush3.bf16.msra.mxu0 %v702_v5  ;;  %638 = vmatpush3.bf16.msra.mxu1 %v710_v10  ;;  %v322_v62 = vrot.slane %v318_v61, %v961_v29  ;;  %p798_p10 = scmp.ne.s32.totalorder %s533_s21, %s797_s22  ;;  %p803_p12 = scmp.lt.s32.totalorder %s797_s22, %s797_s22 }
  0x46   :  { %619 = vmatprep.subr.bf16.mxu0 %v830_v0  ;;  %639 = vmatprep.subr.bf16.mxu1 %v830_v0 }
  0x47   :  { %p804_p13 = por %p803_p12, %p802_p11 }
  0x49   :  { %620 = vmatpush3.bf16.msra.mxu0 %v703_v7  ;;  %640 = vmatpush3.bf16.msra.mxu1 %v711_v12  ;;  %p805_p0 = pnand %p804_p13, %p798_p10 }
  0x4a   :  { %621 = vmatprep.subr.bf16.mxu0 %v830_v0  ;;  %641 = vmatprep.subr.bf16.mxu1 %v830_v0 }
  0x4d   :  { %622 = vmatpush3.bf16.msra.mxu0 %v704_v9  ;;  %642 = vmatpush3.bf16.msra.mxu1 %v712_v15 }
  0x4e   :  { %623 = vmatprep.subr.bf16.mxu0 %v830_v0  ;;  %643 = vmatprep.subr.bf16.mxu1 %v830_v0 }
  0x51   :  { %624 = vmatpush3.bf16.msra.mxu0 %v705_v11  ;;  %644 = vmatpush3.bf16.msra.mxu1 %v713_v17 }
  0x52   :  { %625 = vmatprep.subr.bf16.mxu0 %v830_v0  ;;  %645 = vmatprep.subr.bf16.mxu1 %v830_v0 }
  0x55   :  { %626 = vmatpush3.bf16.msra.mxu0 %v706_v13  ;;  %646 = vmatpush3.bf16.msra.mxu1 %v714_v18 }
  0x56   :  { %651 = vmatprep.subr.bf16.mxu0 %v830_v0  ;;  %671 = vmatprep.subr.bf16.mxu1 %v830_v0 }
  0x58   :  { %628 = vmatmul.mubr.bf16.vlgmr.msra.gmra.mrb[0].mxu0 %v70_v16 }
  0x59   :  { %667 = vmatprep.mubr.msk.bf16.mxu0 %vm831_vm0, %v830_v0  ;;  %652 = vmatpush3.bf16.msra.mxu0 %v715_v19 }
  0x5a   :  { %653 = vmatprep.subr.bf16.mxu0 %v830_v0 }
  0x5d   :  { %654 = vmatpush3.bf16.msra.mxu0 %v716_v20 }
  0x5e   :  { %655 = vmatprep.subr.bf16.mxu0 %v830_v0 }
  0x61   :  { %656 = vmatpush3.bf16.msra.mxu0 %v717_v21 }
  0x62   :  { %657 = vmatprep.subr.bf16.mxu0 %v830_v0 }
  0x65   :  { %658 = vmatpush3.bf16.msra.mxu0 %v718_v22 }
  0x66   :  { %659 = vmatprep.subr.bf16.mxu0 %v830_v0 }
  0x69   :  { %660 = vmatpush3.bf16.msra.mxu0 %v719_v23 }
  0x6a   :  { %661 = vmatprep.subr.bf16.mxu0 %v830_v0 }
  0x6d   :  { %662 = vmatpush3.bf16.msra.mxu0 %v720_v24 }
  0x6e   :  { %663 = vmatprep.subr.bf16.mxu0 %v830_v0 }
  0x71   :  { %664 = vmatpush3.bf16.msra.mxu0 %v721_v39 }
  0x72   :  { %665 = vmatprep.subr.bf16.mxu0 %v830_v0 }
  0x75   :  { %666 = vmatpush3.bf16.msra.mxu0 %v722_v40 }
 0x12b   :  { %v175_v31 = vpop.f32.mrb[0].mxu0 }
 0x12c   :  { %v176_v32 = vadd.f32 %v175_v31, %v92_v30  ;;  %v629_v33 = vpop.f32.mrb[1].mxu0 }
 0x12d   :  { %v178_v34 = vpop.f32.mrb[2].mxu0 }
 0x12e   :  { %vm181_vm1 = vcmp.ge.f32.partialorder %v176_v32, 0.0  ;;  %v182_v35 = vmul.f32 0.01, %v176_v32  ;;  %v630_v36 = vpop.f32.mrb[3].mxu0 }
 0x130   :  { %v183_v37 = vsel %vm181_vm1, %v176_v32, %v182_v35 }
 0x131   :  { %v184_v38 = vpack.c.bf16 %v183_v37, %v183_v37 }
 0x133   :  { %648 = vmatmul.mubr.bf16.vlgmr.msra.gmra.mrb[0].mxu1 %v184_v38 }
 0x134   :  { %687 = vmatprep.mubr.msk.bf16.mxu1 %vm831_vm0, %v830_v0  ;;  %672 = vmatpush3.bf16.msra.mxu1 %v723_v41 }
 0x135   :  { %673 = vmatprep.subr.bf16.mxu1 %v830_v0 }
 0x138   :  { %674 = vmatpush3.bf16.msra.mxu1 %v724_v42 }
 0x139   :  { %675 = vmatprep.subr.bf16.mxu1 %v830_v0 }
 0x13c   :  { %676 = vmatpush3.bf16.msra.mxu1 %v725_v43 }
 0x13d   :  { %677 = vmatprep.subr.bf16.mxu1 %v830_v0 }
 0x140   :  { %678 = vmatpush3.bf16.msra.mxu1 %v726_v44 }
 0x141   :  { %679 = vmatprep.subr.bf16.mxu1 %v830_v0 }
 0x144   :  { %680 = vmatpush3.bf16.msra.mxu1 %v727_v45 }
 0x145   :  { %681 = vmatprep.subr.bf16.mxu1 %v830_v0 }
 0x148   :  { %682 = vmatpush3.bf16.msra.mxu1 %v728_v46 }
 0x149   :  { %683 = vmatprep.subr.bf16.mxu1 %v830_v0 }
 0x14c   :  { %684 = vmatpush3.bf16.msra.mxu1 %v729_v58 }
 0x14d   :  { %685 = vmatprep.subr.bf16.mxu1 %v830_v0  ;;  %v431_v0 = vld [vmem:[%s1004_s6] sm:$0x1] }
 0x14e   :  { %v432_v8 = vunpack.c.l.bf16 %v431_v0 }
 0x150   :  { %686 = vmatpush3.bf16.msra.mxu1 %v730_v59  ;;  %v436_v9 = vrot.slane %v432_v8, %v961_v29 }
 0x206   :  { %v289_v50 = vpop.f32.mrb[0].mxu1 }
 0x207   :  { %v290_v51 = vadd.f32 %v289_v50, %v206_v49  ;;  %v649_v52 = vpop.f32.mrb[1].mxu1 }
 0x208   :  { %v292_v53 = vpop.f32.mrb[2].mxu1 }
 0x209   :  { %vm295_vm2 = vcmp.ge.f32.partialorder %v290_v51, 0.0  ;;  %v296_v54 = vmul.f32 0.01, %v290_v51  ;;  %v650_v55 = vpop.f32.mrb[3].mxu1 }
 0x20b   :  { %v297_v56 = vsel %vm295_vm2, %v290_v51, %v296_v54 }
 0x20c   :  { %v298_v57 = vpack.c.bf16 %v297_v56, %v297_v56 }
 0x20e   :  { %668 = vmatmul.mubr.bf16.vlgmr.msra.gmra.mrb[4].mxu0 %v298_v57 }
 0x2e1   :  { %v405_v63 = vpop.f32.mrb[4].mxu0 }
 0x2e2   :  { %v406_v1 = vadd.f32 %v405_v63, %v322_v62  ;;  %v669_v2 = vpop.f32.mrb[5].mxu0 }
 0x2e3   :  { %v408_v3 = vpop.f32.mrb[6].mxu0 }
 0x2e4   :  { %vm411_vm3 = vcmp.ge.f32.partialorder %v406_v1, 0.0  ;;  %v412_v4 = vmul.f32 0.01, %v406_v1  ;;  %v670_v5 = vpop.f32.mrb[7].mxu0 }
 0x2e6   :  { %v413_v6 = vsel %vm411_vm3, %v406_v1, %v412_v4 }
 0x2e7   :  { %v414_v7 = vpack.c.bf16 %v413_v6, %v413_v6 }
 0x2e9   :  { %688 = vmatmul.mubr.bf16.vlgmr.msra.gmra.mrb[4].mxu1 %v414_v7 }
 0x3bc   :  { %v519_v10 = vpop.f32.mrb[4].mxu1 }
 0x3bd   :  { %v520_v11 = vadd.f32 %v519_v10, %v436_v9  ;;  %v689_v12 = vpop.f32.mrb[5].mxu1 }
 0x3be   :  { %v522_v13 = vpop.f32.mrb[6].mxu1 }
 0x3bf   :  { %525 = vst [vmem:[#allocation8] sm:$0xff] %v520_v11  ;;  %v690_v14 = vpop.f32.mrb[7].mxu1 }
 0x3c0   :  { %808 = shalt.err (!%p805_p0)
}
 0x3c1   :  { %s809_s24 = scalar_lea.hbm %s1005_s7, 128 }
 0x3c2   :  { %p810_p1 = scmp.ne.s32.totalorder %s1005_s7, %s809_s24  ;;  %p813_p2 = scmp.lt.u32.totalorder %s809_s24, %s1005_s7 }
 0x3c4   :  { %p815_p3 = pnand %p813_p2, %p810_p1 }
 0x3c6   :  { %818 = shalt.err (!%p815_p3)
}
 0x3c7   :  { %535 = dma.vmem_to_hbm [thread:$0]  %s533_s21, 128, %s1005_s7, [#allocation4]  }
 0x3c8   :  { %823 = dma.done.wait [#allocation4], 128  }
 0x3c9   :  { %824 = vsyncadd [#allocation4], 4294967168 }
 0x3ca   :  { %539 = vsyncpa [#allocation3], 1 }
 0x3cb   :  { %540 = vsyncpa [#allocation6], 1 }
 0x3cc   :  { %541 = vsyncpa [#allocation4], 1 }

</bundles_post_ra>
